<compile_context>
chip_gen: v7x
topology: tpu7x:2x2x1
jax: 0.10.0
libtpu: 0.0.40
codegen_flags: <defaults>
</compile_context>

<pallas_src>
import functools

import jax
import jax.numpy as jnp
from jax import lax
from jax.experimental import pallas as pl
from jax.experimental.pallas import tpu as pltpu


_WEIGHT_RESIDENT_BYTES = 8 * 1024 * 1024     # collapse N/K axes below this
_VMEM_LIMIT = 48 * 1024 * 1024               # fits v7x (64 MiB physical)


def _pick_tile(dim, target, align):
    """Full dim (always legal) or the largest `align`-multiple divisor <= target."""
    if dim <= target:
        return dim
    t = (target // align) * align
    while t >= align:
        if dim % t == 0:
            return t
        t -= align
    return dim


# ----------------------------------------------------------------------------
# Kernel 1: linear projection  y = x @ w_t + b
# x: (M, K), w_t: (K, N) (pre-transposed), b: (1, N)
# ----------------------------------------------------------------------------
def _linear_resident_kernel(x_ref, w_ref, b_ref, o_ref):
    # Weight/bias blocks have constant index maps -> stay resident in VMEM.
    o_ref[...] = (
        jnp.dot(x_ref[...], w_ref[...], preferred_element_type=jnp.float32)
        + b_ref[...].astype(jnp.float32)
    ).astype(o_ref.dtype)


def _linear_ktiled_kernel(x_ref, w_ref, b_ref, o_ref, acc_ref):
    @pl.when(pl.program_id(2) == 0)
    def _():
        acc_ref[...] = jnp.zeros_like(acc_ref)

    acc_ref[...] += jnp.dot(
        x_ref[...], w_ref[...], preferred_element_type=jnp.float32
    )

    @pl.when(pl.program_id(2) == pl.num_programs(2) - 1)
    def _():
        o_ref[...] = (acc_ref[...] + b_ref[...].astype(jnp.float32)).astype(
            o_ref.dtype
        )


def linear(x, w_t, b, *, tm_target=512):
    """x: (M, K); w_t: (K, N) pre-transposed; b: (1, N).  Returns (M, N)."""
    M, K = x.shape
    N = w_t.shape[1]

    if K * N * w_t.dtype.itemsize <= _WEIGHT_RESIDENT_BYTES:
        # Weight-resident path: single 'parallel' grid axis over M, full K/N
        # per block, no accumulator scratch, lane-dense output.
        tm = _pick_tile(M, tm_target, 8)
        return pl.pallas_call(
            _linear_resident_kernel,
            out_shape=jax.ShapeDtypeStruct((M, N), x.dtype),
            grid_spec=pltpu.PrefetchScalarGridSpec(
                num_scalar_prefetch=0,
                grid=(M // tm,),
                in_specs=[
                    pl.BlockSpec((tm, K), lambda i: (i, 0)),
                    pl.BlockSpec((K, N), lambda i: (0, 0)),
                    pl.BlockSpec((1, N), lambda i: (0, 0)),
                ],
                out_specs=pl.BlockSpec((tm, N), lambda i: (i, 0)),
            ),
            compiler_params=pltpu.CompilerParams(
                dimension_semantics=("parallel",),
                vmem_limit_bytes=_VMEM_LIMIT,
            ),
        )(x, w_t, b)

    # Fallback for oversized weights: K-reduction grid with aligned tiles.
    tm = _pick_tile(M, 512, 8)
    tn = _pick_tile(N, 512, 128)
    tk = _pick_tile(K, 512, 128)
    return pl.pallas_call(
        _linear_ktiled_kernel,
        out_shape=jax.ShapeDtypeStruct((M, N), x.dtype),
        grid_spec=pltpu.PrefetchScalarGridSpec(
            num_scalar_prefetch=0,
            grid=(M // tm, N // tn, K // tk),
            in_specs=[
                pl.BlockSpec((tm, tk), lambda i, j, k: (i, k)),
                pl.BlockSpec((tk, tn), lambda i, j, k: (k, j)),
                pl.BlockSpec((1, tn), lambda i, j, k: (0, j)),
            ],
            out_specs=pl.BlockSpec((tm, tn), lambda i, j, k: (i, j)),
            scratch_shapes=[pltpu.VMEM((tm, tn), jnp.float32)],
        ),
        compiler_params=pltpu.CompilerParams(
            dimension_semantics=("parallel", "parallel", "arbitrary"),
            vmem_limit_bytes=_VMEM_LIMIT,
        ),
    )(x, w_t, b)


# ----------------------------------------------------------------------------
# Kernel 2: flash-style multi-head cross attention.
# q: (B, H, Sq, D), k/v: (B, H, Sk, D) -> out: (B, H, Sq, D)
# Grid: (B, H, Sq//tq, Sk//tk); KV axis innermost ("arbitrary"), online softmax.
# ----------------------------------------------------------------------------
def _flash_mha_kernel(q_ref, k_ref, v_ref, o_ref, m_ref, l_ref, acc_ref, *, scale):
    ki = pl.program_id(3)

    @pl.when(ki == 0)
    def _():
        m_ref[...] = jnp.full(m_ref.shape, -jnp.inf, jnp.float32)
        l_ref[...] = jnp.zeros(l_ref.shape, jnp.float32)
        acc_ref[...] = jnp.zeros(acc_ref.shape, jnp.float32)

    # Keep MXU operands in the input dtype; fold the 1/sqrt(D) scale into q
    # (tq*D multiplies instead of tq*tk on the score matrix).
    q = q_ref[0, 0] * scale          # (tq, D)
    k = k_ref[0, 0]                  # (tk, D)
    v = v_ref[0, 0]                  # (tk, D)

    # QK^T contracting on head_dim (no k.T relayout); f32 accumulation.
    s = lax.dot_general(
        q, k, (((1,), (1,)), ((), ())), preferred_element_type=jnp.float32
    )  # (tq, tk)

    m_prev = m_ref[...]                                        # (tq, 1)
    m_new = jnp.maximum(m_prev, jnp.max(s, axis=-1, keepdims=True))
    alpha = jnp.exp(m_prev - m_new)                            # (tq, 1)
    p = jnp.exp(s - m_new)                                     # (tq, tk) f32

    l_ref[...] = alpha * l_ref[...] + jnp.sum(p, axis=-1, keepdims=True)
    acc_ref[...] = alpha * acc_ref[...] + jnp.dot(
        p.astype(v.dtype), v, preferred_element_type=jnp.float32
    )
    m_ref[...] = m_new

    @pl.when(ki == pl.num_programs(3) - 1)
    def _():
        # Normalize the (tq, D) accumulator once (not the (tq, tk) p matrix).
        inv_l = pl.reciprocal(l_ref[...], approx=True)
        o_ref[0, 0] = (acc_ref[...] * inv_l).astype(o_ref.dtype)


def attention(q_p, k_p, v_p, *, num_heads, scale, tq_target=256, tk_target=512):
    """q_p: (B, Sq, H*D); k_p, v_p: (B, Sk, H*D). Returns (B, Sq, H*D)."""
    B, Sq, HD = q_p.shape
    _, Sk, _ = k_p.shape
    D = HD // num_heads

    # Head-separated layout for the kernel (done by XLA in the wrapper).
    qh = q_p.reshape(B, Sq, num_heads, D).transpose(0, 2, 1, 3)
    kh = k_p.reshape(B, Sk, num_heads, D).transpose(0, 2, 1, 3)
    vh = v_p.reshape(B, Sk, num_heads, D).transpose(0, 2, 1, 3)

    tq = _pick_tile(Sq, tq_target, 8)
    tk = _pick_tile(Sk, tk_target, 8)
    grid = (B, num_heads, Sq // tq, Sk // tk)

    kernel = functools.partial(_flash_mha_kernel, scale=scale)
    out = pl.pallas_call(
        kernel,
        out_shape=jax.ShapeDtypeStruct((B, num_heads, Sq, D), q_p.dtype),
        grid_spec=pltpu.PrefetchScalarGridSpec(
            num_scalar_prefetch=0,
            grid=grid,
            in_specs=[
                pl.BlockSpec((1, 1, tq, D), lambda b, h, qi, ki: (b, h, qi, 0)),
                pl.BlockSpec((1, 1, tk, D), lambda b, h, qi, ki: (b, h, ki, 0)),
                pl.BlockSpec((1, 1, tk, D), lambda b, h, qi, ki: (b, h, ki, 0)),
            ],
            out_specs=pl.BlockSpec((1, 1, tq, D), lambda b, h, qi, ki: (b, h, qi, 0)),
            scratch_shapes=[
                pltpu.VMEM((tq, 1), jnp.float32),   # running max m
                pltpu.VMEM((tq, 1), jnp.float32),   # running denom l
                pltpu.VMEM((tq, D), jnp.float32),   # running PV accumulator
            ],
        ),
        compiler_params=pltpu.CompilerParams(
            dimension_semantics=("parallel", "parallel", "parallel", "arbitrary"),
            vmem_limit_bytes=_VMEM_LIMIT,
        ),
    )(qh, kh, vh)

    # [B, H, Sq, D] -> [B, Sq, H*D]
    return out.transpose(0, 2, 1, 3).reshape(B, Sq, HD)


# ----------------------------------------------------------------------------
# Module: parameter init + forward glue
# ----------------------------------------------------------------------------
def init_cross_attention_params(key, query_dim, key_dim):
    """PyTorch-Linear-like uniform init; weights stored pre-transposed (K, N)."""
    ks = jax.random.split(key, 8)

    def lin_init(kw, kb, out_f, in_f):
        bound = 1.0 / (in_f ** 0.5)
        w = jax.random.uniform(kw, (out_f, in_f), jnp.float32, -bound, bound)
        b = jax.random.uniform(kb, (out_f,), jnp.float32, -bound, bound)
        # Pre-transpose once at init so forward never transposes weights.
        return w.T, b.reshape(1, out_f)

    p = {}
    p["to_q_wt"], p["to_q_b"] = lin_init(ks[0], ks[1], query_dim, query_dim)
    p["to_k_wt"], p["to_k_b"] = lin_init(ks[2], ks[3], query_dim, key_dim)
    p["to_v_wt"], p["to_v_b"] = lin_init(ks[4], ks[5], query_dim, key_dim)
    p["to_out_wt"], p["to_out_b"] = lin_init(ks[6], ks[7], query_dim, query_dim)
    return p


def cross_attention_forward(params, q, k, v, num_heads):
    B, Sq, query_dim = q.shape
    _, Sk, key_dim = k.shape
    head_dim = query_dim // num_heads
    assert head_dim * num_heads == query_dim
    scale = float(head_dim) ** -0.5

    # Projection matmuls over flattened (B*S, dim); weight stays VMEM-resident.
    q_p = linear(q.reshape(B * Sq, query_dim), params["to_q_wt"], params["to_q_b"])
    k_p = linear(k.reshape(B * Sk, key_dim), params["to_k_wt"], params["to_k_b"])
    v_p = linear(v.reshape(B * Sk, key_dim), params["to_v_wt"], params["to_v_b"])

    # Flash-style attention (heads on the grid, online softmax, KV streamed).
    o = attention(
        q_p.reshape(B, Sq, query_dim),
        k_p.reshape(B, Sk, query_dim),
        v_p.reshape(B, Sk, query_dim),
        num_heads=num_heads,
        scale=scale,
    )

    # Output projection; dropout is identity at inference.
    out = linear(o.reshape(B * Sq, query_dim), params["to_out_wt"], params["to_out_b"])
    return out.reshape(B, Sq, query_dim)


# Pure-JAX reference for a sanity check.
def _reference(params, q, k, v, num_heads):
    B, Sq, query_dim = q.shape
    _, Sk, _ = k.shape
    head_dim = query_dim // num_heads
    scale = float(head_dim) ** -0.5

    def lin(x, wt, b):
        return x @ wt + b.reshape(-1)

    def split(x, S):
        return x.reshape(B, S, num_heads, head_dim).transpose(0, 2, 1, 3)

    qp = split(lin(q, params["to_q_wt"], params["to_q_b"]), Sq)
    kp = split(lin(k, params["to_k_wt"], params["to_k_b"]), Sk)
    vp = split(lin(v, params["to_v_wt"], params["to_v_b"]), Sk)
    s = jnp.einsum("bhqd,bhkd->bhqk", qp, kp) * scale
    w = jax.nn.softmax(s, axis=-1)
    o = jnp.einsum("bhqk,bhkd->bhqd", w, vp)
    o = o.transpose(0, 2, 1, 3).reshape(B, Sq, query_dim)
    return lin(o, params["to_out_wt"], params["to_out_b"])


if __name__ == "__main__":
    batch = 2
    seq_q = 8
    seq_k = 8
    query_dim = 32
    key_dim = 16
    num_heads = 8  # head_dim = 4

    root = jax.random.PRNGKey(0)
    k_param, k_q, k_k, k_v = jax.random.split(root, 4)

    params = init_cross_attention_params(k_param, query_dim, key_dim)
    q = jax.random.normal(k_q, (batch, seq_q, query_dim), jnp.float32)
    k = jax.random.normal(k_k, (batch, seq_k, key_dim), jnp.float32)
    v = jax.random.normal(k_v, (batch, seq_k, key_dim), jnp.float32)

    out = cross_attention_forward(params, q, k, v, num_heads)
    out = jax.block_until_ready(out)

    ref = jax.block_until_ready(_reference(params, q, k, v, num_heads))
    assert out.shape == (batch, seq_q, query_dim)
    # Tolerance accounts for the approximate (EUP) softmax reciprocal.
    assert jnp.allclose(out, ref, atol=1e-2, rtol=1e-2), "mismatch vs reference"

    print("KERNEL_OK")
</pallas_src>

<mosaic_0001>
module attributes {stable_mosaic.version = 11 : i64} {
  func.func @_linear_resident_kernel(%arg0: i32, %arg1: memref<16x32xf32, #tpu.memory_space<vmem>>, %arg2: memref<32x32xf32, #tpu.memory_space<vmem>>, %arg3: memref<1x32xf32, #tpu.memory_space<vmem>>, %arg4: memref<16x32xf32, #tpu.memory_space<vmem>>) attributes {dimension_semantics = [#tpu.dimension_semantics<parallel>], iteration_bounds = array<i64: 1>, scalar_prefetch = 0 : i64, scratch_operands = 0 : i64, tpu.core_type = #tpu.core_type<tc>, window_params = [{transform_indices = @transform_0, window_bounds = array<i64: 16, 32>}, {pipeline_mode = #tpu.pipeline_mode<synchronous>, transform_indices = @transform_1, window_bounds = array<i64: 32, 32>}, {pipeline_mode = #tpu.pipeline_mode<synchronous>, transform_indices = @transform_2, window_bounds = array<i64: 1, 32>}, {transform_indices = @transform_3, window_bounds = array<i64: 16, 32>}]} {
    %c0 = arith.constant 0 : index
    %c0_0 = arith.constant 0 : index
    %0 = vector.load %arg1[%c0, %c0_0] : memref<16x32xf32, #tpu.memory_space<vmem>>, vector<16x32xf32>
    %c0_1 = arith.constant 0 : index
    %c0_2 = arith.constant 0 : index
    %1 = vector.load %arg2[%c0_1, %c0_2] : memref<32x32xf32, #tpu.memory_space<vmem>>, vector<32x32xf32>
    %cst = arith.constant dense<0.000000e+00> : vector<16x32xf32>
    %2 = tpu.matmul %0, %1, %cst {dimension_numbers = #tpu.dot_dimension_numbers<[1], [0], [0], [1], [0, 0, 1, 1], [], []>} : vector<16x32xf32>, vector<32x32xf32>, vector<16x32xf32> -> vector<16x32xf32>
    %c0_3 = arith.constant 0 : index
    %c0_4 = arith.constant 0 : index
    %3 = vector.load %arg3[%c0_3, %c0_4] : memref<1x32xf32, #tpu.memory_space<vmem>>, vector<1x32xf32>
    %4 = vector.broadcast %3 : vector<1x32xf32> to vector<16x32xf32>
    %5 = arith.addf %2, %4 : vector<16x32xf32>
    %c0_5 = arith.constant 0 : index
    %c0_6 = arith.constant 0 : index
    %6 = vector.load %arg4[%c0_5, %c0_6] : memref<16x32xf32, #tpu.memory_space<vmem>>, vector<16x32xf32>
    tpu.vector_store %arg4[%c0_5, %c0_6], %5 {strides = array<i32>} : memref<16x32xf32, #tpu.memory_space<vmem>>, vector<16x32xf32>,
    return
  }
  func.func @transform_0(%arg0: i32) -> (i32, i32) {
    %c0_i32 = arith.constant 0 : i32
    %c0_i32_0 = arith.constant 0 : i32
    return %arg0, %c0_i32 : i32, i32
  }
  func.func @transform_1(%arg0: i32) -> (i32, i32) {
    %c0_i32 = arith.constant 0 : i32
    %c0_i32_0 = arith.constant 0 : i32
    %c0_i32_1 = arith.constant 0 : i32
    return %c0_i32, %c0_i32_0 : i32, i32
  }
  func.func @transform_2(%arg0: i32) -> (i32, i32) {
    %c0_i32 = arith.constant 0 : i32
    %c0_i32_0 = arith.constant 0 : i32
    %c0_i32_1 = arith.constant 0 : i32
    return %c0_i32, %c0_i32_0 : i32, i32
  }
  func.func @transform_3(%arg0: i32) -> (i32, i32) {
    %c0_i32 = arith.constant 0 : i32
    %c0_i32_0 = arith.constant 0 : i32
    return %arg0, %c0_i32 : i32, i32
  }
}

</mosaic_0001>

<bundles_post_ra>
// kernel: tpu_custom_call.1
= control target key start
LH: loop header
LB: loop body
LE: loop exit
PB: predicated region body
PF: predicated region fallthrough
CT: control target
= control target key end

     0   :  { %8 = vsyncpa [#allocation3], 0  ;;  %s340_s0 = inlined_call_operand.hbm [shape: f32[16,32], index: 0, kind: input, shape index: {}]   ;;  %s341_s1 = inlined_call_operand.hbm [shape: f32[32,32], index: 1, kind: input, shape index: {}]   ;;  %s342_s2 = inlined_call_operand.vmem [shape: f32[1,32], index: 2, kind: input, shape index: {}]   ;;  %s343_s3 = inlined_call_operand.hbm [shape: f32[16,32], index: 3, kind: output, shape index: {}]  }
   0x1   :  { %9 = vsyncpa [#allocation6], 0 }
   0x2   :  { %10 = vsyncpa [#allocation4], 0  ;;  %s263_s12 = smov [#allocation2]   ;;  %s191_s16 = scalar_lea.hbm %s340_s0, 256 }
   0x3   :  { %s16_s13 = sshll.u32 %s263_s12, 4  ;;  %p192_p0 = scmp.ne.s32.totalorder %s340_s0, %s191_s16  ;;  %s17_s13 = int_to_ptr.vmem [resolvable:$true] %s16_s13 }
   0x4   :  { %p195_p1 = scmp.lt.u32.totalorder %s191_s16, %s340_s0 }
   0x6   :  { %p197_p2 = pnand %p195_p1, %p192_p0 }
   0x8   :  { %200 = shalt.err (!%p197_p2)
}
   0x9   :  { %s201_s21 = scalar_lea.vmem %s17_s13, 256  ;;  %p206_p4 = scmp.lt.s32.totalorder %s17_s13, %s17_s13 }
   0xa   :  { %p202_p3 = scmp.ne.s32.totalorder %s17_s13, %s201_s21  ;;  %p207_p5 = scmp.lt.s32.totalorder %s201_s21, %s201_s21 }
   0xc   :  { %p208_p6 = por %p207_p5, %p206_p4 }
   0xe   :  { %p209_p7 = pnand %p208_p6, %p202_p3 }
  0x10   :  { %212 = shalt.err (!%p209_p7)
}
  0x11   :  { %s264_s22 = smov 128   ;;  %s265_s23 = smov 8  }
  0x12   :  { %22 = dma.hbm_to_vmem [thread:$0]  %s340_s0, 256, %s17_s13, [#allocation3], %s264_s22, %s264_s22, %s265_s23  }
  0x13   :  { %s266_s26 = smov [#allocation5]   ;;  %s213_s30 = scalar_lea.hbm %s341_s1, 512 }
  0x14   :  { %s28_s27 = sshll.u32 %s266_s26, 4  ;;  %p214_p8 = scmp.ne.s32.totalorder %s341_s1, %s213_s30  ;;  %s29_s27 = int_to_ptr.vmem [resolvable:$true] %s28_s27 }
  0x15   :  { %p217_p9 = scmp.lt.u32.totalorder %s213_s30, %s341_s1 }
  0x17   :  { %p219_p10 = pnand %p217_p9, %p214_p8 }
  0x19   :  { %222 = shalt.err (!%p219_p10)
}
  0x1a   :  { %s223_s8 = scalar_lea.vmem %s29_s27, 512  ;;  %p228_p12 = scmp.lt.s32.totalorder %s29_s27, %s29_s27 }
  0x1b   :  { %p224_p11 = scmp.ne.s32.totalorder %s29_s27, %s223_s8  ;;  %p229_p13 = scmp.lt.s32.totalorder %s223_s8, %s223_s8 }
  0x1d   :  { %p230_p0 = por %p229_p13, %p228_p12 }
  0x1f   :  { %p231_p1 = pnand %p230_p0, %p224_p11 }
  0x21   :  { %234 = shalt.err (!%p231_p1)
}
  0x22   :  { %34 = dma.hbm_to_vmem [thread:$0]  %s341_s1, 512, %s29_s27, [#allocation6], %s264_s22, %s264_s22, %s265_s23  }
  0x23   :  { %257 = dma.done.wait [#allocation3], 256  }
  0x24   :  { %258 = vsyncadd [#allocation3], 4294967040 }
  0x25   :  { %259 = dma.done.wait [#allocation6], 512  }
  0x26   :  { %260 = vsyncadd [#allocation6], 4294966784  ;;  %vm56_vm0 = vcmask 261120   ;;  %v45_v0 = vld [vmem:[#allocation5] sm:$0xff]  ;;  %v46_v1 = vld [vmem:[#allocation5 + $0x8] sm:$0xff]  ;;  %s267_s11 = smov [#allocation7]  }
  0x27   :  { %v47_v2 = vld [vmem:[#allocation5 + $0x10] sm:$0xff]  ;;  %v178_v3 = vpack.c.bf16 %v46_v1, %v45_v0  ;;  %v48_v4 = vld [vmem:[#allocation5 + $0x18] sm:$0xff]  ;;  %s145_s12 = sshll.u32 %s267_s11, 4  ;;  %s146_s12 = int_to_ptr.vmem [resolvable:$true] %s145_s12 }
  0x28   :  { %v43_v5 = vld [vmem:[#allocation2] sm:$0xff]  ;;  %v182_v6 = vpack.c.bf16 %v48_v4, %v47_v2  ;;  %v44_v7 = vld [vmem:[#allocation2 + $0x8] sm:$0xff]  ;;  %s235_s13 = scalar_lea.vmem %s146_s12, 256  ;;  %p240_p3 = scmp.lt.s32.totalorder %s146_s12, %s146_s12 }
  0x29   :  { %175 = vmatprep.mubr.msk.f32.mxu0 %vm56_vm0, %v43_v5  ;;  %179 = vmatprep.subr.bf16.mxu0 %v178_v3  ;;  %v158_v8 = vld [vmem:[%s342_s2] ss:$0 sm:$0xff]  ;;  %p236_p2 = scmp.ne.s32.totalorder %s146_s12, %s235_s13  ;;  %p241_p4 = scmp.lt.s32.totalorder %s235_s13, %s235_s13 }
  0x2a   :  { %181 = vmatpush3.bf16.msra.mxu0 %v178_v3 }
  0x2b   :  { %183 = vmatprep.subr.bf16.mxu0 %v182_v6  ;;  %p242_p5 = por %p241_p4, %p240_p3 }
  0x2d   :  { %p243_p6 = pnand %p242_p5, %p236_p2 }
  0x2e   :  { %185 = vmatpush3.bf16.msra.mxu0 %v182_v6 }
  0x31   :  { %176 = vmatmul.mubr.msk.f32.vlgmr.msra.gmra.mrb[0].mxu0 %vm56_vm0, %v44_v7 }
 0x104   :  { %v177_v9 = vpop.f32.mrb[0].mxu0 }
 0x105   :  { %v135_v10 = vadd.f32 %v177_v9, %v158_v8  ;;  %v129_v11 = vpop.f32.mrb[1].mxu0 }
 0x106   :  { %v130_v12 = vadd.f32 %v158_v8, %v129_v11 }
 0x107   :  { %139 = vst.msk [vmem:[#allocation7 + $0x8] sm:$0xff] %vm56_vm0, %v135_v10 }
 0x108   :  { %138 = vst.msk [vmem:[#allocation7] sm:$0xff] %vm56_vm0, %v130_v12 }
 0x109   :  { %246 = shalt.err (!%p243_p6)
}
 0x10a   :  { %s247_s15 = scalar_lea.hbm %s343_s3, 256 }
 0x10b   :  { %p248_p7 = scmp.ne.s32.totalorder %s343_s3, %s247_s15  ;;  %p251_p8 = scmp.lt.u32.totalorder %s247_s15, %s343_s3 }
 0x10d   :  { %p253_p9 = pnand %p251_p8, %p248_p7 }
 0x10f   :  { %256 = shalt.err (!%p253_p9)
}
 0x110   :  { %151 = dma.vmem_to_hbm [thread:$0]  %s146_s12, 256, %s343_s3, [#allocation4], %s264_s22, %s264_s22, %s265_s23  }
 0x111   :  { %261 = dma.done.wait [#allocation4], 256  }
 0x112   :  { %262 = vsyncadd [#allocation4], 4294967040 }
 0x113   :  { %155 = vsyncpa [#allocation3], 1 }
 0x114   :  { %156 = vsyncpa [#allocation6], 1 }
 0x115   :  { %157 = vsyncpa [#allocation4], 1 }

</bundles_post_ra>
